<compile_context>
chip_gen: v7x
topology: tpu7x:2x2x1
jax: 0.10.0
libtpu: 0.0.40
codegen_flags: <defaults>
</compile_context>

<pallas_src>
import functools

import jax
import jax.numpy as jnp
from jax.experimental import pallas as pl
from jax.experimental.pallas import tpu as pltpu


def _round_up(n, m):
    return ((n + m - 1) // m) * m


def _cond_select_kernel(x_ref, w_ref, params_ref, noise_ref, out0_ref, out1_ref,
                        *, h_dim, tau, hard, eps):
    # Linear: (tb, in_dim) @ (in_dim, 2*h_dim) on the MXU (bf16 in, f32 acc).
    y = jnp.dot(x_ref[...], w_ref[...], preferred_element_type=jnp.float32)

    params = params_ref[...]                 # (3, 2*h_dim) f32
    bias = params[0:1, :]
    gamma = params[1:2, :]
    beta = params[2:3, :]
    y = y + bias

    # Two-pass LayerNorm over the full 2*h_dim feature axis (matches PyTorch).
    mean = jnp.mean(y, axis=-1, keepdims=True)
    yc = y - mean
    var = jnp.mean(yc * yc, axis=-1, keepdims=True)
    y = yc * jax.lax.rsqrt(var + eps) * gamma + beta

    # ReLU.
    y = jnp.maximum(y, 0.0)

    # Gumbel-softmax over the pair axis of the (B, 2, h_dim) view.
    # softmax([l0, l1]) == [sigmoid(l0-l1), 1 - sigmoid(l0-l1)], computed with
    # a numerically stable sigmoid (exp of a non-positive argument only).
    z = (y + noise_ref[...].astype(jnp.float32)) * (1.0 / tau)
    l0 = z[:, :h_dim]
    l1 = z[:, h_dim:]
    diff = l0 - l1

    if hard:
        # torch.argmax breaks ties toward index 0, so index 0 wins on >=.
        out0_ref[...] = (diff >= 0.0).astype(out0_ref.dtype)
        out1_ref[...] = (diff < 0.0).astype(out1_ref.dtype)
    else:
        e = jnp.exp(-jnp.abs(diff))
        pos = 1.0 / (1.0 + e)                       # sigmoid(|diff|)
        p0 = jnp.where(diff >= 0.0, pos, 1.0 - pos)  # sigmoid(diff)
        out0_ref[...] = p0.astype(out0_ref.dtype)
        out1_ref[...] = (1.0 - p0).astype(out1_ref.dtype)


def conditional_selection(x, w, b, gamma, beta, gumbel_noise, *,
                          tau=1.0, hard=False, tb=512, eps=1e-5,
                          mxu_dtype=jnp.bfloat16, noise_dtype=jnp.bfloat16,
                          out_dtype=jnp.bfloat16):
    """x: (B, in_dim), w: (in_dim, 2*h_dim), b/gamma/beta: (2*h_dim,),
    gumbel_noise: (B, 2*h_dim).  Returns (out0, out1), each (B, h_dim)."""
    B, in_dim = x.shape
    H2 = w.shape[1]
    h_dim = H2 // 2

    # ---- batch tile selection --------------------------------------------
    # 8-aligned, no bigger than the (8-rounded) batch; for large batches keep
    # >= ~4 grid steps (v7x: 2 TCs, plus DMA/compute overlap on all gens).
    tb = min(int(tb), _round_up(B, 8))
    tb = min(tb, max(128, _round_up(pl.cdiv(B, 4), 8)))
    tb = max(8, _round_up(tb, 8))

    out_bytes = jnp.dtype(out_dtype).itemsize

    def _vmem_est(t):
        per_step = (t * in_dim * 2           # x (bf16)
                    + t * H2 * 2             # noise (bf16)
                    + t * H2 * out_bytes     # two outputs
                    + in_dim * H2 * 2        # w (bf16)
                    + 3 * H2 * 4)            # bias|gamma|beta (f32)
        return 2 * per_step + 6 * t * H2 * 4  # double buffers + f32 temporaries

    # Stay under ~12 MiB so the default scoped VMEM works on v5e (16 MiB) and
    # leaves ample headroom on v6e/v7x.
    while tb > 8 and _vmem_est(tb) > 12 * 1024 * 1024:
        tb = max(8, _round_up(tb // 2, 8))

    grid = (pl.cdiv(B, tb),)   # overhanging last block; no jnp.pad copies

    # bf16 MXU operands / bf16 noise (halves DMA bytes); LN/softmax math in f32.
    x_m = x.astype(mxu_dtype)
    w_m = w.astype(mxu_dtype)
    params = jnp.stack([b, gamma, beta], axis=0).astype(jnp.float32)  # (3, H2)
    noise_m = gumbel_noise.astype(noise_dtype)

    kernel = functools.partial(_cond_select_kernel, h_dim=h_dim,
                               tau=float(tau), hard=bool(hard), eps=float(eps))

    out0, out1 = pl.pallas_call(
        kernel,
        out_shape=(jax.ShapeDtypeStruct((B, h_dim), out_dtype),
                   jax.ShapeDtypeStruct((B, h_dim), out_dtype)),
        grid_spec=pltpu.PrefetchScalarGridSpec(
            num_scalar_prefetch=0,
            grid=grid,
            in_specs=[
                pl.BlockSpec((tb, in_dim), lambda i: (i, 0)),   # x (bf16)
                pl.BlockSpec((in_dim, H2), lambda i: (0, 0)),   # w (bf16)
                pl.BlockSpec((3, H2), lambda i: (0, 0)),        # bias|gamma|beta
                pl.BlockSpec((tb, H2), lambda i: (i, 0)),       # gumbel noise (bf16)
            ],
            # Two direct outputs (fully lane-dense stores when h_dim % 128 == 0).
            out_specs=[
                pl.BlockSpec((tb, h_dim), lambda i: (i, 0)),
                pl.BlockSpec((tb, h_dim), lambda i: (i, 0)),
            ],
        ),
        compiler_params=pltpu.CompilerParams(
            dimension_semantics=("parallel",)),
    )(x_m, w_m, params, noise_m)

    return out0, out1


def _reference(x, w, b, gamma, beta, noise, tau=1.0, hard=False, eps=1e-5,
               mxu_dtype=jnp.bfloat16):
    # Same dtype policy as the kernel: bf16 matmul operands, f32 accumulation.
    y = jnp.dot(x.astype(mxu_dtype), w.astype(mxu_dtype),
                preferred_element_type=jnp.float32) + b
    mean = y.mean(-1, keepdims=True)
    var = ((y - mean) ** 2).mean(-1, keepdims=True)
    y = (y - mean) / jnp.sqrt(var + eps) * gamma + beta
    y = jnp.maximum(y, 0.0)
    B = x.shape[0]
    h = w.shape[1] // 2
    logits = ((y + noise) / tau).reshape(B, 2, h)
    p = jax.nn.softmax(logits, axis=1)
    if hard:
        p = jax.nn.one_hot(jnp.argmax(p, axis=1), 2, axis=1, dtype=p.dtype)
    return p[:, 0, :], p[:, 1, :]


if __name__ == "__main__":
    B, in_dim, h_dim = 16, 32, 64
    H2 = 2 * h_dim

    key = jax.random.PRNGKey(0)
    kx, kw, kb, kn = jax.random.split(key, 4)

    x = jax.random.normal(kx, (B, in_dim), dtype=jnp.float32)
    # deterministic "PyTorch-like" init (uniform for Linear, ones/zeros for LN)
    bound = 1.0 / (in_dim ** 0.5)
    w = jax.random.uniform(kw, (in_dim, H2), jnp.float32, -bound, bound)
    b = jax.random.uniform(kb, (H2,), jnp.float32, -bound, bound)
    gamma = jnp.ones((H2,), jnp.float32)
    beta = jnp.zeros((H2,), jnp.float32)

    # Gumbel noise generated once (glue), shared by kernel and reference.
    gumbel_noise = jax.random.gumbel(kn, (B, H2), dtype=jnp.float32)
    # The kernel consumes the noise in bf16; give the reference the same
    # quantized values so the comparison isolates the kernel math.
    noise_q = gumbel_noise.astype(jnp.bfloat16).astype(jnp.float32)

    # Soft path.
    out0, out1 = conditional_selection(x, w, b, gamma, beta, gumbel_noise,
                                       tau=1.0, hard=False)
    jax.block_until_ready((out0, out1))
    r0, r1 = _reference(x, w, b, gamma, beta, noise_q, tau=1.0, hard=False)
    assert out0.shape == (B, h_dim) and out1.shape == (B, h_dim)
    o0 = out0.astype(jnp.float32)
    o1 = out1.astype(jnp.float32)
    # bf16 output quantization (~2e-3) + bf16 MXU -> 1e-2 tolerance.
    assert jnp.allclose(o0, r0, atol=1e-2), "out0 mismatch"
    assert jnp.allclose(o1, r1, atol=1e-2), "out1 mismatch"
    assert jnp.allclose(o0 + o1, jnp.ones_like(o0), atol=1e-2)

    # Hard path (forward one-hot; exactly representable in bf16).
    h0, h1 = conditional_selection(x, w, b, gamma, beta, gumbel_noise,
                                   tau=1.0, hard=True)
    jax.block_until_ready((h0, h1))
    hr0, hr1 = _reference(x, w, b, gamma, beta, noise_q, tau=1.0, hard=True)
    assert jnp.allclose(h0.astype(jnp.float32), hr0), "hard out0 mismatch"
    assert jnp.allclose(h1.astype(jnp.float32), hr1), "hard out1 mismatch"
    assert jnp.all(h0.astype(jnp.float32) + h1.astype(jnp.float32) == 1.0)

    print("KERNEL_OK")
</pallas_src>

<mosaic_0001>
module attributes {stable_mosaic.version = 11 : i64} {
  func.func @_cond_select_kernel(%arg0: i32, %arg1: memref<16x32xbf16, #tpu.memory_space<vmem>>, %arg2: memref<32x128xbf16, #tpu.memory_space<vmem>>, %arg3: memref<3x128xf32, #tpu.memory_space<vmem>>, %arg4: memref<16x128xbf16, #tpu.memory_space<vmem>>, %arg5: memref<16x64xbf16, #tpu.memory_space<vmem>>, %arg6: memref<16x64xbf16, #tpu.memory_space<vmem>>) attributes {dimension_semantics = [#tpu.dimension_semantics<parallel>], iteration_bounds = array<i64: 1>, scalar_prefetch = 0 : i64, scratch_operands = 0 : i64, tpu.core_type = #tpu.core_type<tc>, window_params = [{transform_indices = @transform_0, window_bounds = array<i64: 16, 32>}, {pipeline_mode = #tpu.pipeline_mode<synchronous>, transform_indices = @transform_1, window_bounds = array<i64: 32, 128>}, {pipeline_mode = #tpu.pipeline_mode<synchronous>, transform_indices = @transform_2, window_bounds = array<i64: 3, 128>}, {transform_indices = @transform_3, window_bounds = array<i64: 16, 128>}, {transform_indices = @transform_4, window_bounds = array<i64: 16, 64>}, {transform_indices = @transform_5, window_bounds = array<i64: 16, 64>}]} {
    %c0 = arith.constant 0 : index
    %c0_0 = arith.constant 0 : index
    %0 = vector.load %arg1[%c0, %c0_0] : memref<16x32xbf16, #tpu.memory_space<vmem>>, vector<16x32xbf16>
    %c0_1 = arith.constant 0 : index
    %c0_2 = arith.constant 0 : index
    %1 = vector.load %arg2[%c0_1, %c0_2] : memref<32x128xbf16, #tpu.memory_space<vmem>>, vector<32x128xbf16>
    %cst = arith.constant dense<0.000000e+00> : vector<16x128xf32>
    %2 = tpu.matmul %0, %1, %cst {dimension_numbers = #tpu.dot_dimension_numbers<[1], [0], [0], [1], [0, 0, 1, 1], [], []>} : vector<16x32xbf16>, vector<32x128xbf16>, vector<16x128xf32> -> vector<16x128xf32>
    %c0_3 = arith.constant 0 : index
    %c0_4 = arith.constant 0 : index
    %3 = vector.load %arg3[%c0_3, %c0_4] : memref<3x128xf32, #tpu.memory_space<vmem>>, vector<3x128xf32>
    %4 = vector.extract_strided_slice %3 {offsets = [0, 0], sizes = [1, 128], strides = [1, 1]} : vector<3x128xf32> to vector<1x128xf32>
    %5 = vector.extract_strided_slice %3 {offsets = [1, 0], sizes = [1, 128], strides = [1, 1]} : vector<3x128xf32> to vector<1x128xf32>
    %6 = vector.extract_strided_slice %3 {offsets = [2, 0], sizes = [1, 128], strides = [1, 1]} : vector<3x128xf32> to vector<1x128xf32>
    %7 = vector.broadcast %4 : vector<1x128xf32> to vector<16x128xf32>
    %8 = arith.addf %2, %7 : vector<16x128xf32>
    %cst_5 = arith.constant dense<0.000000e+00> : vector<16xf32>
    %9 = vector.multi_reduction <add>, %8, %cst_5 [1] : vector<16x128xf32> to vector<16xf32>
    %10 = vector.shape_cast %9 : vector<16xf32> to vector<16x1xf32>
    %cst_6 = arith.constant 1.280000e+02 : f32
    %11 = vector.broadcast %cst_6 : f32 to vector<16x1xf32>
    %12 = arith.divf %10, %11 : vector<16x1xf32>
    %13 = vector.broadcast %12 : vector<16x1xf32> to vector<16x128xf32>
    %14 = arith.subf %8, %13 : vector<16x128xf32>
    %15 = arith.mulf %14, %14 : vector<16x128xf32>
    %cst_7 = arith.constant dense<0.000000e+00> : vector<16xf32>
    %16 = vector.multi_reduction <add>, %15, %cst_7 [1] : vector<16x128xf32> to vector<16xf32>
    %17 = vector.shape_cast %16 : vector<16xf32> to vector<16x1xf32>
    %cst_8 = arith.constant 1.280000e+02 : f32
    %18 = vector.broadcast %cst_8 : f32 to vector<16x1xf32>
    %19 = arith.divf %17, %18 : vector<16x1xf32>
    %cst_9 = arith.constant 9.99999974E-6 : f32
    %20 = vector.broadcast %cst_9 : f32 to vector<16x1xf32>
    %21 = arith.addf %19, %20 : vector<16x1xf32>
    %22 = math.rsqrt %21 : vector<16x1xf32>
    %23 = vector.broadcast %22 : vector<16x1xf32> to vector<16x128xf32>
    %24 = arith.mulf %14, %23 : vector<16x128xf32>
    %25 = vector.broadcast %5 : vector<1x128xf32> to vector<16x128xf32>
    %26 = arith.mulf %24, %25 : vector<16x128xf32>
    %27 = vector.broadcast %6 : vector<1x128xf32> to vector<16x128xf32>
    %28 = arith.addf %26, %27 : vector<16x128xf32>
    %cst_10 = arith.constant 0.000000e+00 : f32
    %29 = vector.broadcast %cst_10 : f32 to vector<16x128xf32>
    %30 = arith.maximumf %28, %29 : vector<16x128xf32>
    %c0_11 = arith.constant 0 : index
    %c0_12 = arith.constant 0 : index
    %31 = vector.load %arg4[%c0_11, %c0_12] : memref<16x128xbf16, #tpu.memory_space<vmem>>, vector<16x128xbf16>
    %32 = arith.extf %31 : vector<16x128xbf16> to vector<16x128xf32>
    %33 = arith.addf %30, %32 : vector<16x128xf32>
    %cst_13 = arith.constant 1.000000e+00 : f32
    %34 = vector.broadcast %cst_13 : f32 to vector<16x128xf32>
    %35 = arith.mulf %33, %34 : vector<16x128xf32>
    %36 = vector.extract_strided_slice %35 {offsets = [0, 0], sizes = [16, 64], strides = [1, 1]} : vector<16x128xf32> to vector<16x64xf32>
    %37 = vector.extract_strided_slice %35 {offsets = [0, 64], sizes = [16, 64], strides = [1, 1]} : vector<16x128xf32> to vector<16x64xf32>
    %38 = arith.subf %36, %37 : vector<16x64xf32>
    %39 = math.absf %38 : vector<16x64xf32>
    %cst_14 = arith.constant 0.000000e+00 : f32
    %40 = vector.broadcast %cst_14 : f32 to vector<16x64xf32>
    %41 = arith.subf %40, %39 : vector<16x64xf32>
    %42 = math.exp %41 : vector<16x64xf32>
    %cst_15 = arith.constant 1.000000e+00 : f32
    %43 = vector.broadcast %cst_15 : f32 to vector<16x64xf32>
    %44 = arith.addf %43, %42 : vector<16x64xf32>
    %cst_16 = arith.constant 1.000000e+00 : f32
    %45 = vector.broadcast %cst_16 : f32 to vector<16x64xf32>
    %46 = arith.divf %45, %44 : vector<16x64xf32>
    %cst_17 = arith.constant 0.000000e+00 : f32
    %47 = vector.broadcast %cst_17 : f32 to vector<16x64xf32>
    %48 = arith.cmpf oge, %38, %47 : vector<16x64xf32>
    %cst_18 = arith.constant 1.000000e+00 : f32
    %49 = vector.broadcast %cst_18 : f32 to vector<16x64xf32>
    %50 = arith.subf %49, %46 : vector<16x64xf32>
    %51 = arith.select %48, %46, %50 : vector<16x64xi1>, vector<16x64xf32>
    %52 = arith.truncf %51 : vector<16x64xf32> to vector<16x64xbf16>
    %c0_19 = arith.constant 0 : index
    %c0_20 = arith.constant 0 : index
    %53 = vector.load %arg5[%c0_19, %c0_20] : memref<16x64xbf16, #tpu.memory_space<vmem>>, vector<16x64xbf16>
    tpu.vector_store %arg5[%c0_19, %c0_20], %52 {strides = array<i32>} : memref<16x64xbf16, #tpu.memory_space<vmem>>, vector<16x64xbf16>,
    %cst_21 = arith.constant 1.000000e+00 : f32
    %54 = vector.broadcast %cst_21 : f32 to vector<16x64xf32>
    %55 = arith.subf %54, %51 : vector<16x64xf32>
    %56 = arith.truncf %55 : vector<16x64xf32> to vector<16x64xbf16>
    %c0_22 = arith.constant 0 : index
    %c0_23 = arith.constant 0 : index
    %57 = vector.load %arg6[%c0_22, %c0_23] : memref<16x64xbf16, #tpu.memory_space<vmem>>, vector<16x64xbf16>
    tpu.vector_store %arg6[%c0_22, %c0_23], %56 {strides = array<i32>} : memref<16x64xbf16, #tpu.memory_space<vmem>>, vector<16x64xbf16>,
    return
  }
  func.func @transform_0(%arg0: i32) -> (i32, i32) {
    %c0_i32 = arith.constant 0 : i32
    %c0_i32_0 = arith.constant 0 : i32
    return %arg0, %c0_i32 : i32, i32
  }
  func.func @transform_1(%arg0: i32) -> (i32, i32) {
    %c0_i32 = arith.constant 0 : i32
    %c0_i32_0 = arith.constant 0 : i32
    %c0_i32_1 = arith.constant 0 : i32
    return %c0_i32, %c0_i32_0 : i32, i32
  }
  func.func @transform_2(%arg0: i32) -> (i32, i32) {
    %c0_i32 = arith.constant 0 : i32
    %c0_i32_0 = arith.constant 0 : i32
    %c0_i32_1 = arith.constant 0 : i32
    return %c0_i32, %c0_i32_0 : i32, i32
  }
  func.func @transform_3(%arg0: i32) -> (i32, i32) {
    %c0_i32 = arith.constant 0 : i32
    %c0_i32_0 = arith.constant 0 : i32
    return %arg0, %c0_i32 : i32, i32
  }
  func.func @transform_4(%arg0: i32) -> (i32, i32) {
    %c0_i32 = arith.constant 0 : i32
    %c0_i32_0 = arith.constant 0 : i32
    return %arg0, %c0_i32 : i32, i32
  }
  func.func @transform_5(%arg0: i32) -> (i32, i32) {
    %c0_i32 = arith.constant 0 : i32
    %c0_i32_0 = arith.constant 0 : i32
    return %arg0, %c0_i32 : i32, i32
  }
}

</mosaic_0001>

<bundles_post_ra>
// kernel: tpu_custom_call.1
= control target key start
LH: loop header
LB: loop body
LE: loop exit
PB: predicated region body
PF: predicated region fallthrough
CT: control target
= control target key end

     0   :  { %11 = vsyncpa [#allocation3], 0  ;;  %s567_s0 = inlined_call_operand.hbm [shape: bf16[16,32], index: 0, kind: input, shape index: {}]   ;;  %s568_s1 = inlined_call_operand.hbm [shape: bf16[32,128], index: 1, kind: input, shape index: {}]   ;;  %s569_s2 = inlined_call_operand.hbm [shape: f32[3,128], index: 2, kind: input, shape index: {}]   ;;  %s570_s3 = inlined_call_operand.vmem [shape: bf16[16,128], index: 3, kind: input, shape index: {}]   ;;  %s571_s4 = inlined_call_operand.hbm [shape: bf16[16,64], index: 4, kind: output, shape index: {0}]   ;;  %s572_s5 = inlined_call_operand.hbm [shape: bf16[16,64], index: 5, kind: output, shape index: {1}]  }
   0x1   :  { %12 = vsyncpa [#allocation6], 0 }
   0x2   :  { %13 = vsyncpa [#allocation4], 0 }
   0x3   :  { %14 = vsyncpa [#allocation10], 0  ;;  %s433_s18 = smov [#allocation5]   ;;  %s434_s20 = smov [#allocation2]  }
   0x4   :  { %s32_s19 = sshll.u32 %s433_s18, 4  ;;  %s20_s21 = sshll.u32 %s434_s20, 4  ;;  %s33_s19 = int_to_ptr.vmem [resolvable:$true] %s32_s19  ;;  %s472_s21 = int_to_ptr.vmem [resolvable:$true] %s20_s21 }
   0x5   :  { %s315_s24 = scalar_lea.hbm %s568_s1, 256 }
   0x6   :  { %p316_p0 = scmp.ne.s32.totalorder %s568_s1, %s315_s24  ;;  %p319_p1 = scmp.lt.u32.totalorder %s315_s24, %s568_s1 }
   0x8   :  { %p321_p2 = pnand %p319_p1, %p316_p0 }
   0xa   :  { %324 = shalt.err (!%p321_p2)
}
   0xb   :  { %s325_s29 = scalar_lea.vmem %s33_s19, 256  ;;  %p330_p4 = scmp.lt.s32.totalorder %s33_s19, %s33_s19 }
   0xc   :  { %p326_p3 = scmp.ne.s32.totalorder %s33_s19, %s325_s29  ;;  %p331_p5 = scmp.lt.s32.totalorder %s325_s29, %s325_s29 }
   0xe   :  { %p332_p6 = por %p331_p5, %p330_p4 }
  0x10   :  { %p333_p7 = pnand %p332_p6, %p326_p3 }
  0x12   :  { %336 = shalt.err (!%p333_p7)
}
  0x13   :  { %s435_s30 = smov 64   ;;  %s436_s6 = smov 4  }
  0x14   :  { %38 = dma.hbm_to_vmem [thread:$0]  %s568_s1, 256, %s33_s19, [#allocation6], %s435_s30, %s435_s30, %s436_s6  }
  0x15   :  { %s337_s11 = scalar_lea.hbm %s567_s0, 128 }
  0x16   :  { %p338_p8 = scmp.ne.s32.totalorder %s567_s0, %s337_s11  ;;  %p341_p9 = scmp.lt.u32.totalorder %s337_s11, %s567_s0 }
  0x18   :  { %p343_p10 = pnand %p341_p9, %p338_p8 }
  0x1a   :  { %346 = shalt.err (!%p343_p10)
}
  0x1b   :  { %s347_s16 = scalar_lea.vmem %s472_s21, 128  ;;  %p352_p12 = scmp.lt.s32.totalorder %s472_s21, %s472_s21 }
  0x1c   :  { %p348_p11 = scmp.ne.s32.totalorder %s472_s21, %s347_s16  ;;  %p353_p13 = scmp.lt.s32.totalorder %s347_s16, %s347_s16 }
  0x1e   :  { %p354_p0 = por %p353_p13, %p352_p12 }
  0x20   :  { %p355_p1 = pnand %p354_p0, %p348_p11 }
  0x22   :  { %358 = shalt.err (!%p355_p1)
}
  0x23   :  { %26 = dma.hbm_to_vmem [thread:$0]  %s567_s0, 128, %s472_s21, [#allocation3], %s435_s30, %s435_s30, %s436_s6  }
  0x24   :  { %s437_s18 = smov [#allocation7]   ;;  %s359_s23 = scalar_lea.hbm %s569_s2, 64 }
  0x25   :  { %s45_s19 = sshll.u32 %s437_s18, 4  ;;  %p360_p2 = scmp.ne.s32.totalorder %s569_s2, %s359_s23  ;;  %s46_s19 = int_to_ptr.vmem [resolvable:$true] %s45_s19 }
  0x26   :  { %p363_p3 = scmp.lt.u32.totalorder %s359_s23, %s569_s2 }
  0x28   :  { %p365_p4 = pnand %p363_p3, %p360_p2 }
  0x2a   :  { %368 = shalt.err (!%p365_p4)
}
  0x2b   :  { %s369_s28 = scalar_lea.vmem %s46_s19, 64  ;;  %p374_p6 = scmp.lt.s32.totalorder %s46_s19, %s46_s19 }
  0x2c   :  { %p370_p5 = scmp.ne.s32.totalorder %s46_s19, %s369_s28  ;;  %p375_p7 = scmp.lt.s32.totalorder %s369_s28, %s369_s28 }
  0x2e   :  { %p376_p8 = por %p375_p7, %p374_p6 }
  0x30   :  { %p377_p9 = pnand %p376_p8, %p370_p5 }
  0x32   :  { %380 = shalt.err (!%p377_p9)
}
  0x33   :  { %48 = dma.hbm_to_vmem [thread:$0]  %s569_s2, 64, %s46_s19, [#allocation6]  }
  0x34   :  { %425 = dma.done.wait [#allocation3], 128  }
  0x35   :  { %426 = vsyncadd [#allocation3], 4294967168 }
  0x36   :  { %427 = dma.done.wait [#allocation6], 320  }
  0x37   :  { %428 = vsyncadd [#allocation6], 4294966976  ;;  %v438_v0 = vmov 0.0   ;;  %vm439_vm0 = vmmov 0   ;;  %v300_v1 = vld [vmem:[#allocation5] sm:$0xff]   ;;  %v301_v2 = vld [vmem:[#allocation5 + $0x8] sm:$0xff]   ;;  %v68_v4 = vlaneseq }
  0x38   :  { %283 = vmatprep.subr.bf16.mxu0 %v438_v0  ;;  %287 = vmatprep.mubr.msk.bf16.mxu0 %vm439_vm0, %v438_v0  ;;  %v302_v3 = vld [vmem:[#allocation2] sm:$0xff]   ;;  %vm89_vm1 = vcmask 261120   ;;  %v67_v7 = vld [vmem:[#allocation7] sm:$0x7]  ;;  %vm215_vm3 = vcmask 519168   ;;  %s441_s8 = smov [#allocation9]  }
  0x39   :  { %284 = vmatpush3.bf16.msra.mxu0 %v300_v1  ;;  %v69_v5 = vshrl.u32 %v68_v4, 7  ;;  %v277_v35 = vld [vmem:[%s570_s3] sm:$0xff]   ;;  %s440_s3 = smov [#allocation8]   ;;  %s247_s9 = sshll.u32 %s441_s8, 4  ;;  %s529_s9 = int_to_ptr.vmem [resolvable:$true] %s247_s9 }
  0x3a   :  { %285 = vmatprep.subr.bf16.mxu0 %v438_v0  ;;  %v278_v39 = vunpack.c.l.bf16 %v277_v35  ;;  %v279_v45 = vunpack.c.h.bf16 %v277_v35  ;;  %s235_s7 = sshll.u32 %s440_s3, 4  ;;  %s236_s7 = int_to_ptr.vmem [resolvable:$true] %s235_s7 }
  0x3b   :  { %v70_v6 = vsub.s32 0, %v69_v5  ;;  %v159_v29 = vsub.s32 1, %v69_v5  ;;  %v165_v30 = vsub.s32 2, %v69_v5  ;;  %s381_s10 = scalar_lea.vmem %s236_s7, 128  ;;  %p386_p11 = scmp.lt.s32.totalorder %s236_s7, %s236_s7 }
  0x3c   :  { %p382_p10 = scmp.ne.s32.totalorder %s236_s7, %s381_s10  ;;  %p387_p12 = scmp.lt.s32.totalorder %s381_s10, %s381_s10 }
  0x3d   :  { %286 = vmatpush3.bf16.msra.mxu0 %v301_v2  ;;  %v71_v8 = vrot.slane %v67_v7, %v70_v6  ;;  %v160_v31 = vrot.slane %v67_v7, %v159_v29  ;;  %v166_v34 = vrot.slane %v67_v7, %v165_v30 }
  0x3e   :  { %p388_p13 = por %p387_p12, %p386_p11 }
  0x40   :  { %288 = vmatmul.mubr.msk.bf16.vlgmr.msra.gmra.mrb[0].mxu0 %vm89_vm1, %v302_v3  ;;  %p389_p0 = pnand %p388_p13, %p382_p10 }
 0x113   :  { %v127_v9 = vpop.f32.mrb[0].mxu0 }
 0x114   :  { %v128_v10 = vadd.f32 %v127_v9, %v71_v8  ;;  %v289_v11 = vpop.f32.mrb[1].mxu0 }
 0x115   :  { %v130_v12 = vpop.f32.mrb[2].mxu0 }
 0x116   :  { %134 = vadd.xlane.f32.xlu0 %v128_v10  ;;  %v290_v13 = vpop.f32.mrb[3].mxu0  ;;  %v131_v14 = vadd.f32 %v130_v12, %v71_v8 }
 0x11a   :  { %136 = vadd.xlane.f32.xlu0 %v131_v14 }
 0x1a3   :  { %v135_v15 = vpop.xlane.xlu0 %134 }
 0x1a4   :  { %v139_v16 = vmul.f32 0.0078125, %v135_v15 }
 0x1a6   :  { %v141_v17 = vsub.f32 %v128_v10, %v139_v16 }
 0x1a7   :  { %v137_v18 = vpop.xlane.xlu0 %136 }
 0x1a8   :  { %v140_v19 = vmul.f32 0.0078125, %v137_v18  ;;  %v143_v20 = vmul.f32 %v141_v17, %v141_v17 }
 0x1aa   :  { %v142_v21 = vsub.f32 %v131_v14, %v140_v19  ;;  %145 = vadd.xlane.f32.xlu1 %v143_v20 }
 0x1ac   :  { %v144_v22 = vmul.f32 %v142_v21, %v142_v21 }
 0x1ae   :  { %147 = vadd.xlane.f32.xlu1 %v144_v22 }
 0x237   :  { %v146_v23 = vpop.xlane.xlu1 %145 }
 0x238   :  { %v149_v24 = vmul.f32 0.0078125, %v146_v23 }
 0x23a   :  { %v151_v25 = vadd.f32 1e-05, %v149_v24 }
 0x23b   :  { %v148_v26 = vpop.xlane.xlu1 %147 }
 0x23c   :  { %303 = vrsqrt.f32 %v151_v25  ;;  %v150_v27 = vmul.f32 0.0078125, %v148_v26 }
 0x23e   :  { %v152_v28 = vadd.f32 1e-05, %v150_v27 }
 0x240   :  { %305 = vrsqrt.f32 %v152_v28 }
 0x246   :  { %v304_v32 = vpop.eup %303 }
 0x247   :  { %v155_v33 = vmul.f32 %v304_v32, %v141_v17 }
 0x249   :  { %v161_v36 = vmul.f32 %v160_v31, %v155_v33 }
 0x24a   :  { %v306_v37 = vpop.eup %305 }
 0x24b   :  { %v167_v38 = vadd.f32 %v166_v34, %v161_v36  ;;  %v156_v40 = vmul.f32 %v306_v37, %v142_v21 }
 0x24d   :  { %v169_v41 = vmax.f32 %v167_v38, 0.0  ;;  %v162_v42 = vmul.f32 %v160_v31, %v156_v40 }
 0x24f   :  { %v175_v43 = vadd.f32 %v278_v39, %v169_v41  ;;  %v168_v44 = vadd.f32 %v166_v34, %v162_v42 }
 0x251   :  { %179 = vrot.lane.b32.xlu0 %v175_v43, %s435_s30  ;;  %v170_v46 = vmax.f32 %v168_v44, 0.0 }
 0x253   :  { %v176_v47 = vadd.f32 %v279_v45, %v170_v46 }
 0x255   :  { %181 = vrot.lane.b32.xlu1 %v176_v47, %s435_s30 }
 0x2c3   :  { %v180_v48 = vpop.permute.xlu0 %179 }
 0x2c4   :  { %v185_v49 = vsub.f32 %v175_v43, %v180_v48 }
 0x2c6   :  { %v187_v50 = vand.u32 2147483647, %v185_v49  ;;  %vm201_vm2 = vcmp.ge.f32.partialorder %v185_v49, 0.0 }
 0x2c7   :  { %v182_v51 = vpop.permute.xlu1 %181 }
 0x2c8   :  { %v189_v52 = vsub.f32 0.0, %v187_v50  ;;  %v186_v53 = vsub.f32 %v176_v47, %v182_v51 }
 0x2ca   :  { %v191_v54 = vmul.f32 1.442695, %v189_v52  ;;  %v188_v55 = vand.u32 2147483647, %v186_v53  ;;  %vm202_vm4 = vcmp.ge.f32.partialorder %v186_v53, 0.0 }
 0x2cc   :  { %307 = vpow2.f32 %v191_v54  ;;  %v190_v56 = vsub.f32 0.0, %v188_v55 }
 0x2ce   :  { %v193_v57 = vmul.f32 1.442695, %v190_v56 }
 0x2d0   :  { %309 = vpow2.f32 %v193_v57 }
 0x2d6   :  { %v308_v58 = vpop.eup %307 }
 0x2d7   :  { %v195_v59 = vadd.f32 1.0, %v308_v58 }
 0x2d9   :  { %311 = vrcp.f32 %v195_v59 }
 0x2da   :  { %v310_v60 = vpop.eup %309 }
 0x2db   :  { %v196_v61 = vadd.f32 1.0, %v310_v60 }
 0x2dd   :  { %313 = vrcp.f32 %v196_v61 }
 0x2e3   :  { %v312_v62 = vpop.eup %311 }
 0x2e4   :  { %v203_v63 = vsub.f32 1.0, %v312_v62 }
 0x2e6   :  { %v205_v0 = vsel %vm201_vm2, %v312_v62, %v203_v63 }
 0x2e7   :  { %v314_v1 = vpop.eup %313  ;;  %v272_v2 = vpack.c.bf16 %v205_v0, %v205_v0  ;;  %v218_v3 = vsub.f32 1.0, %v205_v0 }
 0x2e8   :  { %v204_v4 = vsub.f32 1.0, %v314_v1 }
 0x2e9   :  { %v274_v5 = vpack.c.bf16 %v218_v3, %v218_v3  ;;  %216 = vst.msk [vmem:[#allocation8] sm:$0xf] %vm215_vm3, %v272_v2 }
 0x2ea   :  { %v206_v6 = vsel %vm202_vm4, %v314_v1, %v204_v4 }
 0x2eb   :  { %v273_v7 = vpack.c.bf16 %v206_v6, %v206_v6  ;;  %v219_v8 = vsub.f32 1.0, %v206_v6  ;;  %228 = vst.msk [vmem:[#allocation9] sm:$0xf] %vm215_vm3, %v274_v5 }
 0x2ed   :  { %v275_v9 = vpack.c.bf16 %v219_v8, %v219_v8  ;;  %217 = vst.msk [vmem:[#allocation8 + $0x4] sm:$0xf] %vm215_vm3, %v273_v7 }
 0x2ee   :  { %392 = shalt.err (!%p389_p0)
}
 0x2ef   :  { %s393_s13 = scalar_lea.hbm %s571_s4, 128 }
 0x2f0   :  { %p394_p1 = scmp.ne.s32.totalorder %s571_s4, %s393_s13  ;;  %p397_p2 = scmp.lt.u32.totalorder %s393_s13, %s571_s4 }
 0x2f2   :  { %p399_p3 = pnand %p397_p2, %p394_p1 }
 0x2f4   :  { %402 = shalt.err (!%p399_p3)
}
 0x2f5   :  { %241 = dma.vmem_to_hbm [thread:$0]  %s236_s7, 128, %s571_s4, [#allocation4], %s435_s30, %s435_s30, %s436_s6   ;;  %229 = vst.msk [vmem:[#allocation9 + $0x4] sm:$0xf] %vm215_vm3, %v275_v9 }
 0x2f6   :  { %s403_s19 = scalar_lea.vmem %s529_s9, 128  ;;  %p408_p5 = scmp.lt.s32.totalorder %s529_s9, %s529_s9 }
 0x2f7   :  { %p404_p4 = scmp.ne.s32.totalorder %s529_s9, %s403_s19  ;;  %p409_p6 = scmp.lt.s32.totalorder %s403_s19, %s403_s19 }
 0x2f9   :  { %p410_p7 = por %p409_p6, %p408_p5 }
 0x2fb   :  { %p411_p8 = pnand %p410_p7, %p404_p4 }
 0x2fd   :  { %414 = shalt.err (!%p411_p8)
}
 0x2fe   :  { %s415_s23 = scalar_lea.hbm %s572_s5, 128 }
 0x2ff   :  { %p416_p9 = scmp.ne.s32.totalorder %s572_s5, %s415_s23  ;;  %p419_p10 = scmp.lt.u32.totalorder %s415_s23, %s572_s5 }
 0x301   :  { %p421_p11 = pnand %p419_p10, %p416_p9 }
 0x303   :  { %424 = shalt.err (!%p421_p11)
}
 0x304   :  { %253 = dma.vmem_to_hbm [thread:$0]  %s529_s9, 128, %s572_s5, [#allocation10], %s435_s30, %s435_s30, %s436_s6  }
 0x305   :  { %429 = dma.done.wait [#allocation4], 128  }
 0x306   :  { %430 = vsyncadd [#allocation4], 4294967168 }
 0x307   :  { %431 = dma.done.wait [#allocation10], 128  }
 0x308   :  { %432 = vsyncadd [#allocation10], 4294967168 }
 0x309   :  { %260 = vsyncpa [#allocation3], 1 }
 0x30a   :  { %261 = vsyncpa [#allocation6], 1 }
 0x30b   :  { %262 = vsyncpa [#allocation4], 1 }
 0x30c   :  { %263 = vsyncpa [#allocation10], 1 }

</bundles_post_ra>
